<compile_context>
chip_gen: v7x
topology: tpu7x:2x2x1
jax: 0.10.0
libtpu: 0.0.40
codegen_flags: <defaults>
</compile_context>

<pallas_src>
import functools

import jax
import jax.numpy as jnp
from jax import lax
from jax.experimental import pallas as pl
from jax.experimental.pallas import tpu as pltpu

_BIG = 3.0e38  # plain Python float -> jaxpr literal (no captured jnp consts)


def _round_up(x, m):
    return (x + m - 1) // m * m


def _get_reweight_func(option):
    if option == 'none':
        return lambda iou: jnp.ones_like(iou)
    elif option == 'linear':
        return lambda iou: iou
    elif option == 'exp':
        return lambda iou: jnp.exp(iou) - 1.0
    raise ValueError(option)


def _pick_vmem_limit():
    # v5e/v6e have 128 MiB physical VMEM -> allow 96 MiB scoped;
    # v7x has 64 MiB -> keep 48 MiB so the compiler retains headroom.
    try:
        cap = getattr(pltpu.get_tpu_info(), "vmem_capacity_bytes", None)
    except Exception:
        cap = None
    if cap is not None and cap >= 100 * 1024 * 1024:
        return 96 * 1024 * 1024
    return 48 * 1024 * 1024


# --------------------------- pass 1: mining ----------------------------------
def _mining_kernel(feats_ref, featsT_ref, labr_ref, labc_ref,
                   sim_ref, pmin_ref, nmax_ref, acc_sm, *, n_real, tm, tn):
    i = pl.program_id(0)
    j = pl.program_id(1)
    nj = pl.num_programs(1)

    @pl.when(j == 0)
    def _():
        acc_sm[0] = _BIG        # running min over positive-pair similarities
        acc_sm[1] = -_BIG       # running max over negative-pair similarities

    # f32 similarity tile on the MXU -- computed once per (i, j); pass 2 reuses
    # the HBM-cached result instead of re-running the matmul.
    sim = jnp.dot(feats_ref[...], featsT_ref[...],
                  preferred_element_type=jnp.float32)            # (tm, tn)

    # Thin iotas; only pass 1 pays for validity / diagonal handling.
    row_ids = i * tm + lax.broadcasted_iota(jnp.int32, (tm, 1), 0)
    col_ids = j * tn + lax.broadcasted_iota(jnp.int32, (1, tn), 1)
    valid = (row_ids < n_real) & (col_ids < n_real)              # (tm, tn)
    diag = row_ids == col_ids                                    # (tm, tn)
    eq = labr_ref[...] == labc_ref[...]                          # sentinel-padded

    # poison: diagonal -> +BIG (can never be a mined positive),
    #         padded   -> -BIG (can never be a mined negative)
    sim_fix = jnp.where(valid, jnp.where(diag, _BIG, sim), -_BIG)
    sim_ref[...] = sim_fix

    # lane-axis reductions first (XLU fast path), then scalar reduce.
    tile_pos_min = jnp.min(jnp.min(jnp.where(eq, sim_fix, _BIG), axis=1))
    tile_neg_max = jnp.max(jnp.max(jnp.where(eq, -_BIG, sim_fix), axis=1))
    acc_sm[0] = jnp.minimum(acc_sm[0], tile_pos_min)
    acc_sm[1] = jnp.maximum(acc_sm[1], tile_neg_max)

    @pl.when(j == nj - 1)
    def _():
        pmin_ref[0, 0] = acc_sm[0]
        nmax_ref[0, 0] = acc_sm[1]


# --------------------------- pass 2: loss ------------------------------------
def _loss_kernel(gates_ref, sim_ref, labr_ref, labc_ref, w_ref,
                 pos_ref, neg_ref, epos_acc, eneg_acc, *,
                 scale_pos, scale_neg, thresh, n_real, n_pad_cols, tm):
    i = pl.program_id(0)
    j = pl.program_id(1)
    nj = pl.num_programs(1)

    @pl.when(j == 0)
    def _():
        epos_acc[...] = jnp.zeros_like(epos_acc)
        eneg_acc[...] = jnp.zeros_like(eneg_acc)

    sim = sim_ref[...]                      # (tm, tn): diag=+BIG, padded=-BIG
    eq = labr_ref[...] == labc_ref[...]     # (tm, tn)
    pos_keep_below = gates_ref[0]           # neg_sim_max + margin
    neg_keep_above = gates_ref[1]           # pos_sim_min - margin

    # Mined masks: validity / diagonal handling is implicit (sentinel labels
    # + poisoned sim), so this is the whole per-element select chain.
    pos_m = eq & (sim < pos_keep_below)
    neg_m = jnp.logical_and(jnp.logical_not(eq), sim > neg_keep_above)

    sim_t = sim - thresh
    # Non-candidates (incl. padded cols) contribute exp(0)=1; the surplus
    # (n_pad_cols - n_real) ones are removed once at the last column step.
    epos_acc[...] += jnp.sum(jnp.exp(-scale_pos * jnp.where(pos_m, sim_t, 0.0)),
                             axis=1, keepdims=True)
    eneg_acc[...] += jnp.sum(jnp.exp(scale_neg * jnp.where(neg_m, sim_t, 0.0)),
                             axis=1, keepdims=True)

    @pl.when(j == nj - 1)
    def _():
        pad_corr = float(n_pad_cols - n_real) - 1.0   # "- pad + 1" folded
        lp_pos = jnp.log(epos_acc[...] - pad_corr) / scale_pos   # (tm, 1)
        lp_neg = jnp.log(eneg_acc[...] - pad_corr) / scale_neg   # (tm, 1)
        row_ids = i * tm + lax.broadcasted_iota(jnp.int32, (tm, 1), 0)
        vrow = (row_ids < n_real).astype(jnp.float32)
        pos_ref[0, 0] = jnp.sum(lp_pos * w_ref[...])   # w = reweight(iou)*keep
        neg_ref[0, 0] = jnp.sum(lp_neg * vrow)


# --------------------------- wrapper ------------------------------------------
def _ms_forward(feats, labels, ious, *, scale_pos, scale_neg, iou_threshold,
                thresh, margin, reweight_func, row_tile, col_tile, vmem_limit):
    feats = jnp.asarray(feats, jnp.float32)
    labels = jnp.asarray(labels, jnp.int32).reshape(-1)
    ious = jnp.asarray(ious, jnp.float32).reshape(-1)
    n, d = feats.shape

    # Rows pad to a multiple of tm, columns only to a multiple of tn (>=128);
    # both clamped for small inputs so tiny batches don't pay for full tiles.
    tm = min(row_tile, _round_up(n, 8))
    tn = min(col_tile, _round_up(n, 128))
    n_rows = _round_up(n, tm)
    n_cols = _round_up(n, tn)
    d_pad = _round_up(d, 128)
    gm, gn = n_rows // tm, n_cols // tn

    # Zero-padded features (padded sim entries are poisoned in pass 1).
    feats_p = jnp.zeros((n_rows, d_pad), jnp.float32).at[:n, :d].set(feats)
    featsT_p = jnp.zeros((d_pad, n_cols), jnp.float32).at[:d, :n].set(feats.T)

    # Sentinel-padded labels: padded rows/cols never match anything (row and
    # column sentinels differ so padded x padded never matches either).
    sent = jnp.min(labels) - 1
    lab_rows = jnp.full((n_rows, 1), sent, jnp.int32).at[:n, 0].set(labels)
    lab_cols = jnp.full((1, n_cols), sent - 1, jnp.int32).at[0, :n].set(labels)

    # Per-row positive weight = reweight(iou) * (iou >= threshold); padded -> 0.
    keep = ious >= iou_threshold
    w = jnp.where(keep, reweight_func(ious), 0.0).astype(jnp.float32)
    w_p = jnp.zeros((n_rows, 1), jnp.float32).at[:n, 0].set(w)
    kcount = jnp.sum(keep.astype(jnp.float32))

    cparams = pltpu.CompilerParams(
        dimension_semantics=("parallel", "arbitrary"),
        vmem_limit_bytes=vmem_limit)

    # ---------------- pass 1: sim cache + global mining thresholds -----------
    mining = functools.partial(_mining_kernel, n_real=n, tm=tm, tn=tn)
    sim_fix, pmin, nmax = pl.pallas_call(
        mining,
        out_shape=(jax.ShapeDtypeStruct((n_rows, n_cols), jnp.float32),
                   jax.ShapeDtypeStruct((gm, 1), jnp.float32),
                   jax.ShapeDtypeStruct((gm, 1), jnp.float32)),
        grid=(gm, gn),
        in_specs=[
            pl.BlockSpec((tm, d_pad), lambda i, j: (i, 0)),   # feats row tile
            pl.BlockSpec((d_pad, tn), lambda i, j: (0, j)),   # feats^T col tile
            pl.BlockSpec((tm, 1), lambda i, j: (i, 0)),       # row labels
            pl.BlockSpec((1, tn), lambda i, j: (0, j)),       # col labels
        ],
        out_specs=(
            pl.BlockSpec((tm, tn), lambda i, j: (i, j)),      # cached sim
            pl.BlockSpec((1, 1), lambda i, j: (i, 0),
                         memory_space=pltpu.MemorySpace.SMEM),
            pl.BlockSpec((1, 1), lambda i, j: (i, 0),
                         memory_space=pltpu.MemorySpace.SMEM),
        ),
        scratch_shapes=[pltpu.SMEM((2,), jnp.float32)],
        compiler_params=cparams,
    )(feats_p, featsT_p, lab_rows, lab_cols)

    pos_sim_min = jnp.min(pmin)
    neg_sim_max = jnp.max(nmax)
    gates = jnp.stack([neg_sim_max + margin, pos_sim_min - margin])

    # ---------------- pass 2: per-row-tile loss partials ---------------------
    loss_k = functools.partial(_loss_kernel, scale_pos=scale_pos,
                               scale_neg=scale_neg, thresh=thresh,
                               n_real=n, n_pad_cols=n_cols, tm=tm)
    pos_part, neg_part = pl.pallas_call(
        loss_k,
        out_shape=(jax.ShapeDtypeStruct((gm, 1), jnp.float32),
                   jax.ShapeDtypeStruct((gm, 1), jnp.float32)),
        grid=(gm, gn),
        in_specs=[
            pl.BlockSpec(memory_space=pltpu.MemorySpace.SMEM),  # gates (2,)
            pl.BlockSpec((tm, tn), lambda i, j: (i, j)),         # cached sim
            pl.BlockSpec((tm, 1), lambda i, j: (i, 0)),          # row labels
            pl.BlockSpec((1, tn), lambda i, j: (0, j)),          # col labels
            pl.BlockSpec((tm, 1), lambda i, j: (i, 0)),          # pos weights
        ],
        out_specs=(
            pl.BlockSpec((1, 1), lambda i, j: (i, 0),
                         memory_space=pltpu.MemorySpace.SMEM),
            pl.BlockSpec((1, 1), lambda i, j: (i, 0),
                         memory_space=pltpu.MemorySpace.SMEM),
        ),
        scratch_shapes=[pltpu.VMEM((tm, 1), jnp.float32),
                        pltpu.VMEM((tm, 1), jnp.float32)],
        compiler_params=cparams,
    )(gates, sim_fix, lab_rows, lab_cols, w_p)

    # ---------------- scalar epilogue (plain JAX, negligible) ----------------
    # pos_label_mask.any() and neg_label_mask.any() in the reference are both
    # equivalent to (pos_sim_min - margin < neg_sim_max), so one predicate
    # implements both early-return branches of the PyTorch forward.
    gate = (pos_sim_min - margin) < neg_sim_max
    # NB: like PyTorch, pos_loss is NaN when no row passes the IoU threshold.
    pos_loss = jnp.sum(pos_part) / kcount
    neg_loss = jnp.sum(neg_part) / float(n)
    return jnp.where(gate, pos_loss + neg_loss, jnp.float32(0.0))


class MultiSimilarityLossPallas:
    def __init__(self, scale_pos, scale_neg, iou_threshold, lamdba=0.5,
                 reweight_func='none', row_tile=512, col_tile=512):
        self.thresh = float(lamdba)
        self.margin = 0.1
        self.scale_pos = float(scale_pos)
        self.scale_neg = float(scale_neg)
        self.iou_threshold = float(iou_threshold)
        self.reweight_func = _get_reweight_func(reweight_func)
        self._forward = jax.jit(functools.partial(
            _ms_forward,
            scale_pos=self.scale_pos, scale_neg=self.scale_neg,
            iou_threshold=self.iou_threshold, thresh=self.thresh,
            margin=self.margin, reweight_func=self.reweight_func,
            row_tile=int(row_tile), col_tile=int(col_tile),
            vmem_limit=_pick_vmem_limit()))

    def __call__(self, features, labels, ious):
        features = jnp.asarray(features)
        labels = jnp.asarray(labels)
        ious = jnp.asarray(ious)
        assert features.shape[0] == labels.shape[0] == ious.shape[0]
        return self._forward(features, labels, ious)


# --------------------------- pure-JAX reference -------------------------------
def _reference(feats, labels, ious, *, scale_pos, scale_neg, iou_threshold,
               thresh, margin, reweight_func):
    n = feats.shape[0]
    labels = labels.reshape(-1, 1)
    sim = feats @ feats.T
    pos = labels == labels.T
    neg = ~pos
    pos = pos & (~jnp.eye(n, dtype=bool))
    pos_min = jnp.min(jnp.where(pos, sim, jnp.inf))
    neg_max = jnp.max(jnp.where(neg, sim, -jnp.inf))
    neg = neg & (sim + margin > pos_min)
    pos = pos & (sim - margin < neg_max)
    simt = sim - thresh
    lp_pos = jnp.log(jnp.sum(jnp.exp(-scale_pos * simt * pos), axis=1) + 1) / scale_pos
    keep = (ious >= iou_threshold).astype(jnp.float32)
    coef = reweight_func(ious)
    pos_loss = jnp.sum(lp_pos * coef * keep) / jnp.sum(keep)
    lp_neg = jnp.log(jnp.sum(jnp.exp(scale_neg * simt * neg), axis=1) + 1) / scale_neg
    neg_loss = jnp.mean(lp_neg)
    return jnp.where(jnp.any(pos),
                     jnp.where(jnp.any(neg), pos_loss + neg_loss, pos_loss),
                     0.0)


if __name__ == "__main__":
    N, D = 8, 32
    key = jax.random.PRNGKey(0)
    kc, kl, kn, ki = jax.random.split(key, 4)

    # Clustered unit-norm embeddings keep every similarity well away from the
    # mining thresholds, so the check is robust to MXU-vs-XLA matmul rounding.
    centers = jax.random.normal(kc, (3, D), dtype=jnp.float32)
    labels = jax.random.randint(kl, (N,), 0, 3, dtype=jnp.int32)
    feats = centers[labels] + 0.05 * jax.random.normal(kn, (N, D), dtype=jnp.float32)
    feats = feats / jnp.linalg.norm(feats, axis=1, keepdims=True)
    ious = jax.random.uniform(ki, (N,), dtype=jnp.float32).at[0].set(0.9)

    loss_mod = MultiSimilarityLossPallas(scale_pos=2.0, scale_neg=40.0,
                                         iou_threshold=0.25, lamdba=0.5,
                                         reweight_func='none')
    out = jax.block_until_ready(loss_mod(feats, labels, ious))

    ref = _reference(feats, labels, ious, scale_pos=2.0, scale_neg=40.0,
                     iou_threshold=0.25, thresh=0.5, margin=0.1,
                     reweight_func=_get_reweight_func('none'))
    # tolerance covers possible MXU f32-emulation vs XLA default-precision
    # differences in the similarity matmul; real logic errors are >> 1e-2.
    assert jnp.allclose(out, ref, rtol=2e-3, atol=2e-3), (out, ref)
    print("KERNEL_OK")
</pallas_src>

<mosaic_0001>
module attributes {stable_mosaic.version = 11 : i64} {
  func.func @_mining_kernel(%arg0: i32, %arg1: i32, %arg2: memref<8x128xf32, #tpu.memory_space<vmem>>, %arg3: memref<128x128xf32, #tpu.memory_space<vmem>>, %arg4: memref<8x1xi32, #tpu.memory_space<vmem>>, %arg5: memref<1x128xi32, #tpu.memory_space<vmem>>, %arg6: memref<8x128xf32, #tpu.memory_space<vmem>>, %arg7: memref<1x1xf32, #tpu.memory_space<smem>>, %arg8: memref<1x1xf32, #tpu.memory_space<smem>>, %arg9: memref<2xf32, #tpu.memory_space<smem>>) attributes {dimension_semantics = [#tpu.dimension_semantics<parallel>, #tpu.dimension_semantics<arbitrary>], iteration_bounds = array<i64: 1, 1>, scalar_prefetch = 0 : i64, scratch_operands = 1 : i64, tpu.core_type = #tpu.core_type<tc>, window_params = [{transform_indices = @transform_0, window_bounds = array<i64: 8, 128>}, {transform_indices = @transform_1, window_bounds = array<i64: 128, 128>}, {transform_indices = @transform_2, window_bounds = array<i64: 8, 1>}, {transform_indices = @transform_3, window_bounds = array<i64: 1, 128>}, {transform_indices = @transform_4, window_bounds = array<i64: 8, 128>}, {transform_indices = @transform_5, window_bounds = array<i64: 1, 1>}, {transform_indices = @transform_6, window_bounds = array<i64: 1, 1>}]} {
    %c0_i32 = arith.constant 0 : i32
    %0 = arith.cmpi eq, %arg1, %c0_i32 : i32
    %1 = arith.extui %0 : i1 to i32
    %c0_i32_0 = arith.constant 0 : i32
    %2 = arith.cmpi ne, %1, %c0_i32_0 : i32
    scf.if %2 {
      %cst_25 = arith.constant 3.000000e+38 : f32
      %c0_26 = arith.constant 0 : index
      %57 = memref.load %arg9[%c0_26] : memref<2xf32, #tpu.memory_space<smem>>
      memref.store %cst_25, %arg9[%c0_26] : memref<2xf32, #tpu.memory_space<smem>>
      %cst_27 = arith.constant -3.000000e+38 : f32
      %c1_28 = arith.constant 1 : index
      %58 = memref.load %arg9[%c1_28] : memref<2xf32, #tpu.memory_space<smem>>
      memref.store %cst_27, %arg9[%c1_28] : memref<2xf32, #tpu.memory_space<smem>>
    } else {
    }
    %c0 = arith.constant 0 : index
    %c0_1 = arith.constant 0 : index
    %3 = vector.load %arg2[%c0, %c0_1] : memref<8x128xf32, #tpu.memory_space<vmem>>, vector<8x128xf32>
    %c0_2 = arith.constant 0 : index
    %c0_3 = arith.constant 0 : index
    %4 = vector.load %arg3[%c0_2, %c0_3] : memref<128x128xf32, #tpu.memory_space<vmem>>, vector<128x128xf32>
    %cst = arith.constant dense<0.000000e+00> : vector<8x128xf32>
    %5 = tpu.matmul %3, %4, %cst {dimension_numbers = #tpu.dot_dimension_numbers<[1], [0], [0], [1], [0, 0, 1, 1], [], []>} : vector<8x128xf32>, vector<128x128xf32>, vector<8x128xf32> -> vector<8x128xf32>
    %c8_i32 = arith.constant 8 : i32
    %6 = arith.muli %arg0, %c8_i32 : i32
    %7 = tpu.iota {dimensions = array<i32: 0>} : vector<8x1xi32>
    %8 = vector.broadcast %6 : i32 to vector<8x1xi32>
    %9 = arith.addi %8, %7 : vector<8x1xi32>
    %c128_i32 = arith.constant 128 : i32
    %10 = arith.muli %arg1, %c128_i32 : i32
    %11 = tpu.iota {dimensions = array<i32: 1>} : vector<1x128xi32>
    %12 = vector.broadcast %10 : i32 to vector<1x128xi32>
    %13 = arith.addi %12, %11 : vector<1x128xi32>
    %c8_i32_4 = arith.constant 8 : i32
    %14 = vector.broadcast %c8_i32_4 : i32 to vector<8x1xi32>
    %15 = arith.cmpi slt, %9, %14 : vector<8x1xi32>
    %c8_i32_5 = arith.constant 8 : i32
    %16 = vector.broadcast %c8_i32_5 : i32 to vector<1x128xi32>
    %17 = arith.cmpi slt, %13, %16 : vector<1x128xi32>
    %18 = vector.broadcast %15 : vector<8x1xi1> to vector<8x128xi1>
    %19 = vector.broadcast %17 : vector<1x128xi1> to vector<8x128xi1>
    %20 = arith.andi %18, %19 : vector<8x128xi1>
    %21 = vector.broadcast %9 : vector<8x1xi32> to vector<8x128xi32>
    %22 = vector.broadcast %13 : vector<1x128xi32> to vector<8x128xi32>
    %23 = arith.cmpi eq, %21, %22 : vector<8x128xi32>
    %c0_6 = arith.constant 0 : index
    %c0_7 = arith.constant 0 : index
    %24 = vector.load %arg4[%c0_6, %c0_7] : memref<8x1xi32, #tpu.memory_space<vmem>>, vector<8x1xi32>
    %c0_8 = arith.constant 0 : index
    %c0_9 = arith.constant 0 : index
    %25 = vector.load %arg5[%c0_8, %c0_9] : memref<1x128xi32, #tpu.memory_space<vmem>>, vector<1x128xi32>
    %26 = vector.broadcast %24 : vector<8x1xi32> to vector<8x128xi32>
    %27 = vector.broadcast %25 : vector<1x128xi32> to vector<8x128xi32>
    %28 = arith.cmpi eq, %26, %27 : vector<8x128xi32>
    %cst_10 = arith.constant 3.000000e+38 : f32
    %29 = vector.broadcast %cst_10 : f32 to vector<8x128xf32>
    %30 = arith.select %23, %29, %5 : vector<8x128xi1>, vector<8x128xf32>
    %cst_11 = arith.constant -3.000000e+38 : f32
    %31 = vector.broadcast %cst_11 : f32 to vector<8x128xf32>
    %32 = arith.select %20, %30, %31 : vector<8x128xi1>, vector<8x128xf32>
    %c0_12 = arith.constant 0 : index
    %c0_13 = arith.constant 0 : index
    %33 = vector.load %arg6[%c0_12, %c0_13] : memref<8x128xf32, #tpu.memory_space<vmem>>, vector<8x128xf32>
    tpu.vector_store %arg6[%c0_12, %c0_13], %32 {strides = array<i32>} : memref<8x128xf32, #tpu.memory_space<vmem>>, vector<8x128xf32>,
    %cst_14 = arith.constant 3.000000e+38 : f32
    %34 = vector.broadcast %cst_14 : f32 to vector<8x128xf32>
    %35 = arith.select %28, %32, %34 : vector<8x128xi1>, vector<8x128xf32>
    %cst_15 = arith.constant dense<0x7F800000> : vector<8xf32>
    %36 = vector.multi_reduction <minimumf>, %35, %cst_15 [1] : vector<8x128xf32> to vector<8xf32>
    %37 = vector.shape_cast %36 : vector<8xf32> to vector<1x8xf32>
    %cst_16 = arith.constant dense<0x7F800000> : vector<1xf32>
    %38 = vector.multi_reduction <minimumf>, %37, %cst_16 [1] : vector<1x8xf32> to vector<1xf32>
    %39 = vector.shape_cast %38 : vector<1xf32> to vector<1x1xf32>
    %40 = vector.extract %39[0, 0] : f32 from vector<1x1xf32>
    %cst_17 = arith.constant -3.000000e+38 : f32
    %41 = vector.broadcast %cst_17 : f32 to vector<8x128xf32>
    %42 = arith.select %28, %41, %32 : vector<8x128xi1>, vector<8x128xf32>
    %cst_18 = arith.constant dense<0xFF800000> : vector<8xf32>
    %43 = vector.multi_reduction <maximumf>, %42, %cst_18 [1] : vector<8x128xf32> to vector<8xf32>
    %44 = vector.shape_cast %43 : vector<8xf32> to vector<1x8xf32>
    %cst_19 = arith.constant dense<0xFF800000> : vector<1xf32>
    %45 = vector.multi_reduction <maximumf>, %44, %cst_19 [1] : vector<1x8xf32> to vector<1xf32>
    %46 = vector.shape_cast %45 : vector<1xf32> to vector<1x1xf32>
    %47 = vector.extract %46[0, 0] : f32 from vector<1x1xf32>
    %c0_20 = arith.constant 0 : index
    %48 = memref.load %arg9[%c0_20] : memref<2xf32, #tpu.memory_space<smem>>
    %49 = arith.minimumf %48, %40 : f32
    %c0_21 = arith.constant 0 : index
    %50 = memref.load %arg9[%c0_21] : memref<2xf32, #tpu.memory_space<smem>>
    memref.store %49, %arg9[%c0_21] : memref<2xf32, #tpu.memory_space<smem>>
    %c1 = arith.constant 1 : index
    %51 = memref.load %arg9[%c1] : memref<2xf32, #tpu.memory_space<smem>>
    %52 = arith.maximumf %51, %47 : f32
    %c1_22 = arith.constant 1 : index
    %53 = memref.load %arg9[%c1_22] : memref<2xf32, #tpu.memory_space<smem>>
    memref.store %52, %arg9[%c1_22] : memref<2xf32, #tpu.memory_space<smem>>
    %c0_i32_23 = arith.constant 0 : i32
    %54 = arith.cmpi eq, %arg1, %c0_i32_23 : i32
    %55 = arith.extui %54 : i1 to i32
    %c0_i32_24 = arith.constant 0 : i32
    %56 = arith.cmpi ne, %55, %c0_i32_24 : i32
    scf.if %56 {
      %c0_25 = arith.constant 0 : index
      %57 = memref.load %arg9[%c0_25] : memref<2xf32, #tpu.memory_space<smem>>
      %c0_26 = arith.constant 0 : index
      %c0_27 = arith.constant 0 : index
      %58 = memref.load %arg7[%c0_26, %c0_27] : memref<1x1xf32, #tpu.memory_space<smem>>
      memref.store %57, %arg7[%c0_26, %c0_27] : memref<1x1xf32, #tpu.memory_space<smem>>
      %c1_28 = arith.constant 1 : index
      %59 = memref.load %arg9[%c1_28] : memref<2xf32, #tpu.memory_space<smem>>
      %c0_29 = arith.constant 0 : index
      %c0_30 = arith.constant 0 : index
      %60 = memref.load %arg8[%c0_29, %c0_30] : memref<1x1xf32, #tpu.memory_space<smem>>
      memref.store %59, %arg8[%c0_29, %c0_30] : memref<1x1xf32, #tpu.memory_space<smem>>
    } else {
    }
    return
  }
  func.func @transform_0(%arg0: i32, %arg1: i32) -> (i32, i32) {
    %c0_i32 = arith.constant 0 : i32
    %c0_i32_0 = arith.constant 0 : i32
    return %arg0, %c0_i32 : i32, i32
  }
  func.func @transform_1(%arg0: i32, %arg1: i32) -> (i32, i32) {
    %c0_i32 = arith.constant 0 : i32
    %c0_i32_0 = arith.constant 0 : i32
    return %c0_i32, %arg1 : i32, i32
  }
  func.func @transform_2(%arg0: i32, %arg1: i32) -> (i32, i32) {
    %c0_i32 = arith.constant 0 : i32
    %c0_i32_0 = arith.constant 0 : i32
    return %arg0, %c0_i32 : i32, i32
  }
  func.func @transform_3(%arg0: i32, %arg1: i32) -> (i32, i32) {
    %c0_i32 = arith.constant 0 : i32
    %c0_i32_0 = arith.constant 0 : i32
    return %c0_i32, %arg1 : i32, i32
  }
  func.func @transform_4(%arg0: i32, %arg1: i32) -> (i32, i32) {
    %c0_i32 = arith.constant 0 : i32
    return %arg0, %arg1 : i32, i32
  }
  func.func @transform_5(%arg0: i32, %arg1: i32) -> (i32, i32) {
    %c0_i32 = arith.constant 0 : i32
    %c0_i32_0 = arith.constant 0 : i32
    return %arg0, %c0_i32 : i32, i32
  }
  func.func @transform_6(%arg0: i32, %arg1: i32) -> (i32, i32) {
    %c0_i32 = arith.constant 0 : i32
    %c0_i32_0 = arith.constant 0 : i32
    return %arg0, %c0_i32 : i32, i32
  }
}

module attributes {stable_mosaic.version = 11 : i64} {
  func.func @_loss_kernel(%arg0: i32, %arg1: i32, %arg2: memref<2xf32, #tpu.memory_space<smem>>, %arg3: memref<8x128xf32, #tpu.memory_space<vmem>>, %arg4: memref<8x1xi32, #tpu.memory_space<vmem>>, %arg5: memref<1x128xi32, #tpu.memory_space<vmem>>, %arg6: memref<8x1xf32, #tpu.memory_space<vmem>>, %arg7: memref<1x1xf32, #tpu.memory_space<smem>>, %arg8: memref<1x1xf32, #tpu.memory_space<smem>>, %arg9: memref<8x1xf32, #tpu.memory_space<vmem>>, %arg10: memref<8x1xf32, #tpu.memory_space<vmem>>) attributes {dimension_semantics = [#tpu.dimension_semantics<parallel>, #tpu.dimension_semantics<arbitrary>], iteration_bounds = array<i64: 1, 1>, scalar_prefetch = 0 : i64, scratch_operands = 2 : i64, tpu.core_type = #tpu.core_type<tc>, window_params = [{transform_indices = @transform_0, window_bounds = array<i64: 2>}, {transform_indices = @transform_1, window_bounds = array<i64: 8, 128>}, {transform_indices = @transform_2, window_bounds = array<i64: 8, 1>}, {transform_indices = @transform_3, window_bounds = array<i64: 1, 128>}, {transform_indices = @transform_4, window_bounds = array<i64: 8, 1>}, {transform_indices = @transform_5, window_bounds = array<i64: 1, 1>}, {transform_indices = @transform_6, window_bounds = array<i64: 1, 1>}]} {
    %c0_i32 = arith.constant 0 : i32
    %0 = arith.cmpi eq, %arg1, %c0_i32 : i32
    %1 = arith.extui %0 : i1 to i32
    %c0_i32_0 = arith.constant 0 : i32
    %2 = arith.cmpi ne, %1, %c0_i32_0 : i32
    scf.if %2 {
      %cst_24 = arith.constant 0.000000e+00 : f32
      %43 = vector.broadcast %cst_24 : f32 to vector<8x1xf32>
      %c0_25 = arith.constant 0 : index
      %c0_26 = arith.constant 0 : index
      %44 = vector.load %arg9[%c0_25, %c0_26] : memref<8x1xf32, #tpu.memory_space<vmem>>, vector<8x1xf32>
      tpu.vector_store %arg9[%c0_25, %c0_26], %43 {strides = array<i32>} : memref<8x1xf32, #tpu.memory_space<vmem>>, vector<8x1xf32>,
      %cst_27 = arith.constant 0.000000e+00 : f32
      %45 = vector.broadcast %cst_27 : f32 to vector<8x1xf32>
      %c0_28 = arith.constant 0 : index
      %c0_29 = arith.constant 0 : index
      %46 = vector.load %arg10[%c0_28, %c0_29] : memref<8x1xf32, #tpu.memory_space<vmem>>, vector<8x1xf32>
      tpu.vector_store %arg10[%c0_28, %c0_29], %45 {strides = array<i32>} : memref<8x1xf32, #tpu.memory_space<vmem>>, vector<8x1xf32>,
    } else {
    }
    %c0 = arith.constant 0 : index
    %c0_1 = arith.constant 0 : index
    %3 = vector.load %arg3[%c0, %c0_1] : memref<8x128xf32, #tpu.memory_space<vmem>>, vector<8x128xf32>
    %c0_2 = arith.constant 0 : index
    %c0_3 = arith.constant 0 : index
    %4 = vector.load %arg4[%c0_2, %c0_3] : memref<8x1xi32, #tpu.memory_space<vmem>>, vector<8x1xi32>
    %c0_4 = arith.constant 0 : index
    %c0_5 = arith.constant 0 : index
    %5 = vector.load %arg5[%c0_4, %c0_5] : memref<1x128xi32, #tpu.memory_space<vmem>>, vector<1x128xi32>
    %6 = vector.broadcast %4 : vector<8x1xi32> to vector<8x128xi32>
    %7 = vector.broadcast %5 : vector<1x128xi32> to vector<8x128xi32>
    %8 = arith.cmpi eq, %6, %7 : vector<8x128xi32>
    %c0_6 = arith.constant 0 : index
    %9 = memref.load %arg2[%c0_6] : memref<2xf32, #tpu.memory_space<smem>>
    %c1 = arith.constant 1 : index
    %10 = memref.load %arg2[%c1] : memref<2xf32, #tpu.memory_space<smem>>
    %11 = vector.broadcast %9 : f32 to vector<8x128xf32>
    %12 = arith.cmpf olt, %3, %11 : vector<8x128xf32>
    %13 = arith.andi %8, %12 : vector<8x128xi1>
    %cst = arith.constant dense<true> : vector<8x128xi1>
    %14 = arith.xori %8, %cst : vector<8x128xi1>
    %15 = vector.broadcast %10 : f32 to vector<8x128xf32>
    %16 = arith.cmpf ogt, %3, %15 : vector<8x128xf32>
    %17 = arith.andi %14, %16 : vector<8x128xi1>
    %cst_7 = arith.constant 5.000000e-01 : f32
    %18 = vector.broadcast %cst_7 : f32 to vector<8x128xf32>
    %19 = arith.subf %3, %18 : vector<8x128xf32>
    %c0_8 = arith.constant 0 : index
    %c0_9 = arith.constant 0 : index
    %20 = vector.load %arg9[%c0_8, %c0_9] : memref<8x1xf32, #tpu.memory_space<vmem>>, vector<8x1xf32>
    %cst_10 = arith.constant 0.000000e+00 : f32
    %21 = vector.broadcast %cst_10 : f32 to vector<8x128xf32>
    %22 = arith.select %13, %19, %21 : vector<8x128xi1>, vector<8x128xf32>
    %cst_11 = arith.constant -2.000000e+00 : f32
    %23 = vector.broadcast %cst_11 : f32 to vector<8x128xf32>
    %24 = arith.mulf %23, %22 : vector<8x128xf32>
    %25 = math.exp %24 : vector<8x128xf32>
    %cst_12 = arith.constant dense<0.000000e+00> : vector<8xf32>
    %26 = vector.multi_reduction <add>, %25, %cst_12 [1] : vector<8x128xf32> to vector<8xf32>
    %27 = vector.shape_cast %26 : vector<8xf32> to vector<8x1xf32>
    %28 = arith.addf %20, %27 : vector<8x1xf32>
    %c0_13 = arith.constant 0 : index
    %c0_14 = arith.constant 0 : index
    %29 = vector.load %arg9[%c0_13, %c0_14] : memref<8x1xf32, #tpu.memory_space<vmem>>, vector<8x1xf32>
    tpu.vector_store %arg9[%c0_13, %c0_14], %28 {strides = array<i32>} : memref<8x1xf32, #tpu.memory_space<vmem>>, vector<8x1xf32>,
    %c0_15 = arith.constant 0 : index
    %c0_16 = arith.constant 0 : index
    %30 = vector.load %arg10[%c0_15, %c0_16] : memref<8x1xf32, #tpu.memory_space<vmem>>, vector<8x1xf32>
    %cst_17 = arith.constant 0.000000e+00 : f32
    %31 = vector.broadcast %cst_17 : f32 to vector<8x128xf32>
    %32 = arith.select %17, %19, %31 : vector<8x128xi1>, vector<8x128xf32>
    %cst_18 = arith.constant 4.000000e+01 : f32
    %33 = vector.broadcast %cst_18 : f32 to vector<8x128xf32>
    %34 = arith.mulf %33, %32 : vector<8x128xf32>
    %35 = math.exp %34 : vector<8x128xf32>
    %cst_19 = arith.constant dense<0.000000e+00> : vector<8xf32>
    %36 = vector.multi_reduction <add>, %35, %cst_19 [1] : vector<8x128xf32> to vector<8xf32>
    %37 = vector.shape_cast %36 : vector<8xf32> to vector<8x1xf32>
    %38 = arith.addf %30, %37 : vector<8x1xf32>
    %c0_20 = arith.constant 0 : index
    %c0_21 = arith.constant 0 : index
    %39 = vector.load %arg10[%c0_20, %c0_21] : memref<8x1xf32, #tpu.memory_space<vmem>>, vector<8x1xf32>
    tpu.vector_store %arg10[%c0_20, %c0_21], %38 {strides = array<i32>} : memref<8x1xf32, #tpu.memory_space<vmem>>, vector<8x1xf32>,
    %c0_i32_22 = arith.constant 0 : i32
    %40 = arith.cmpi eq, %arg1, %c0_i32_22 : i32
    %41 = arith.extui %40 : i1 to i32
    %c0_i32_23 = arith.constant 0 : i32
    %42 = arith.cmpi ne, %41, %c0_i32_23 : i32
    scf.if %42 {
      %c0_24 = arith.constant 0 : index
      %c0_25 = arith.constant 0 : index
      %43 = vector.load %arg9[%c0_24, %c0_25] : memref<8x1xf32, #tpu.memory_space<vmem>>, vector<8x1xf32>
      %cst_26 = arith.constant 1.190000e+02 : f32
      %44 = vector.broadcast %cst_26 : f32 to vector<8x1xf32>
      %45 = arith.subf %43, %44 : vector<8x1xf32>
      %46 = math.log %45 : vector<8x1xf32>
      %cst_27 = arith.constant 2.000000e+00 : f32
      %47 = vector.broadcast %cst_27 : f32 to vector<8x1xf32>
      %48 = arith.divf %46, %47 : vector<8x1xf32>
      %c0_28 = arith.constant 0 : index
      %c0_29 = arith.constant 0 : index
      %49 = vector.load %arg10[%c0_28, %c0_29] : memref<8x1xf32, #tpu.memory_space<vmem>>, vector<8x1xf32>
      %cst_30 = arith.constant 1.190000e+02 : f32
      %50 = vector.broadcast %cst_30 : f32 to vector<8x1xf32>
      %51 = arith.subf %49, %50 : vector<8x1xf32>
      %52 = math.log %51 : vector<8x1xf32>
      %cst_31 = arith.constant 4.000000e+01 : f32
      %53 = vector.broadcast %cst_31 : f32 to vector<8x1xf32>
      %54 = arith.divf %52, %53 : vector<8x1xf32>
      %c8_i32 = arith.constant 8 : i32
      %55 = arith.muli %arg0, %c8_i32 : i32
      %56 = tpu.iota {dimensions = array<i32: 0>} : vector<8x1xi32>
      %57 = vector.broadcast %55 : i32 to vector<8x1xi32>
      %58 = arith.addi %57, %56 : vector<8x1xi32>
      %c8_i32_32 = arith.constant 8 : i32
      %59 = vector.broadcast %c8_i32_32 : i32 to vector<8x1xi32>
      %60 = arith.cmpi slt, %58, %59 : vector<8x1xi32>
      %61 = arith.extui %60 : vector<8x1xi1> to vector<8x1xi32>
      %62 = arith.sitofp %61 : vector<8x1xi32> to vector<8x1xf32>
      %c0_33 = arith.constant 0 : index
      %c0_34 = arith.constant 0 : index
      %63 = vector.load %arg6[%c0_33, %c0_34] : memref<8x1xf32, #tpu.memory_space<vmem>>, vector<8x1xf32>
      %64 = arith.mulf %48, %63 : vector<8x1xf32>
      %65 = vector.shape_cast %64 : vector<8x1xf32> to vector<1x8x1xf32>
      %cst_35 = arith.constant dense<0.000000e+00> : vector<1xf32>
      %66 = vector.multi_reduction <add>, %65, %cst_35 [1, 2] : vector<1x8x1xf32> to vector<1xf32>
      %67 = vector.shape_cast %66 : vector<1xf32> to vector<1x1x1xf32>
      %68 = vector.extract %67[0, 0, 0] : f32 from vector<1x1x1xf32>
      %c0_36 = arith.constant 0 : index
      %c0_37 = arith.constant 0 : index
      %69 = memref.load %arg7[%c0_36, %c0_37] : memref<1x1xf32, #tpu.memory_space<smem>>
      memref.store %68, %arg7[%c0_36, %c0_37] : memref<1x1xf32, #tpu.memory_space<smem>>
      %70 = arith.mulf %54, %62 : vector<8x1xf32>
      %71 = vector.shape_cast %70 : vector<8x1xf32> to vector<1x8x1xf32>
      %cst_38 = arith.constant dense<0.000000e+00> : vector<1xf32>
      %72 = vector.multi_reduction <add>, %71, %cst_38 [1, 2] : vector<1x8x1xf32> to vector<1xf32>
      %73 = vector.shape_cast %72 : vector<1xf32> to vector<1x1x1xf32>
      %74 = vector.extract %73[0, 0, 0] : f32 from vector<1x1x1xf32>
      %c0_39 = arith.constant 0 : index
      %c0_40 = arith.constant 0 : index
      %75 = memref.load %arg8[%c0_39, %c0_40] : memref<1x1xf32, #tpu.memory_space<smem>>
      memref.store %74, %arg8[%c0_39, %c0_40] : memref<1x1xf32, #tpu.memory_space<smem>>
    } else {
    }
    return
  }
  func.func @transform_0(%arg0: i32, %arg1: i32) -> i32 {
    %c0_i32 = arith.constant 0 : i32
    %c0_i32_0 = arith.constant 0 : i32
    return %c0_i32 : i32
  }
  func.func @transform_1(%arg0: i32, %arg1: i32) -> (i32, i32) {
    %c0_i32 = arith.constant 0 : i32
    return %arg0, %arg1 : i32, i32
  }
  func.func @transform_2(%arg0: i32, %arg1: i32) -> (i32, i32) {
    %c0_i32 = arith.constant 0 : i32
    %c0_i32_0 = arith.constant 0 : i32
    return %arg0, %c0_i32 : i32, i32
  }
  func.func @transform_3(%arg0: i32, %arg1: i32) -> (i32, i32) {
    %c0_i32 = arith.constant 0 : i32
    %c0_i32_0 = arith.constant 0 : i32
    return %c0_i32, %arg1 : i32, i32
  }
  func.func @transform_4(%arg0: i32, %arg1: i32) -> (i32, i32) {
    %c0_i32 = arith.constant 0 : i32
    %c0_i32_0 = arith.constant 0 : i32
    return %arg0, %c0_i32 : i32, i32
  }
  func.func @transform_5(%arg0: i32, %arg1: i32) -> (i32, i32) {
    %c0_i32 = arith.constant 0 : i32
    %c0_i32_0 = arith.constant 0 : i32
    return %arg0, %c0_i32 : i32, i32
  }
  func.func @transform_6(%arg0: i32, %arg1: i32) -> (i32, i32) {
    %c0_i32 = arith.constant 0 : i32
    %c0_i32_0 = arith.constant 0 : i32
    return %arg0, %c0_i32 : i32, i32
  }
}

</mosaic_0001>

<bundles_post_ra>
// kernel: _ms_forward.2
= control target key start
LH: loop header
LB: loop body
LE: loop exit
PB: predicated region body
PF: predicated region fallthrough
CT: control target
= control target key end

     0   :  { %12 = vsyncpa [#allocation4], 0  ;;  %v330_v3 = vmov 0.0|0.0   ;;  %vm331_vm0 = vmmov 0   ;;  %v332_v6 = vmov 0.0   ;;  %v333_v7 = vmov 0   ;;  %s457_s0 = inlined_call_operand.vmem [shape: f32[8,128], index: 0, kind: input, shape index: {}]   ;;  %s458_s1 = inlined_call_operand.vmem [shape: f32[128,128], index: 1, kind: input, shape index: {}]   ;;  %s459_s2 = inlined_call_operand.vmem [shape: s32[8,1], index: 2, kind: input, shape index: {}]   ;;  %s460_s3 = inlined_call_operand.vmem [shape: s32[1,128], index: 3, kind: input, shape index: {}]   ;;  %s461_s4 = inlined_call_operand.vmem [shape: f32[8,128], index: 4, kind: output, shape index: {0}]   ;;  %s462_s5 = inlined_call_operand.hbm [shape: f32[1,1], index: 5, kind: output, shape index: {1}]   ;;  %s463_s6 = inlined_call_operand.hbm [shape: f32[1,1], index: 6, kind: output, shape index: {2}]  }
   0x1   :  { %v31_v0 = vld [vmem:[%s458_s1] sm:$0xff]  ;;  %v32_v1 = vld [vmem:[%s458_s1 + $0x8] sm:$0xff]  ;;  %v33_v2 = vld [vmem:[%s458_s1 + $0x10] sm:$0xff]  ;;  %269 = vmatprep.subr.bf16.mxu0 %v330_v3  ;;  %266 = vmatprep.mubr.msk.f32.mxu0 %vm331_vm0, %v332_v6 }
   0x2   :  { %v270_v4 = vpack.c.bf16 %v32_v1, %v31_v0  ;;  %v34_v5 = vld [vmem:[%s458_s1 + $0x18] sm:$0xff]  ;;  %305 = vset.pattern.permute.xlu0 %v333_v7  ;;  %v35_v9 = vld [vmem:[%s458_s1 + $0x20] sm:$0xff]  ;;  %v36_v10 = vld [vmem:[%s458_s1 + $0x28] sm:$0xff] }
   0x3   :  { %v273_v8 = vpack.c.bf16 %v34_v5, %v33_v2  ;;  %v135_v11 = vld [vmem:[%s459_s2] sm:$0xff] }
   0x4   :  { %271 = vmatpush3.bf16.msra.mxu0 %v270_v4  ;;  %138 = vperm.xlu0 %305, %v135_v11  }
   0x5   :  { %272 = vmatprep.subr.bf16.mxu0 %v330_v3 }
   0x6   :  { %13 = vsyncpa [#allocation6], 0  ;;  %v276_v12 = vpack.c.bf16 %v36_v10, %v35_v9  ;;  %v37_v13 = vld [vmem:[%s458_s1 + $0x30] sm:$0xff]  ;;  %v38_v14 = vld [vmem:[%s458_s1 + $0x38] sm:$0xff]  ;;  %v118_v29 = vlaneseq  ;;  %s335_s12 = smov -3e+38  }
   0x7   :  { %v279_v15 = vpack.c.bf16 %v38_v14, %v37_v13  ;;  %v39_v16 = vld [vmem:[%s458_s1 + $0x40] sm:$0xff]  ;;  %v40_v17 = vld [vmem:[%s458_s1 + $0x48] sm:$0xff]  ;;  %v41_v19 = vld [vmem:[%s458_s1 + $0x50] sm:$0xff]  ;;  %s306_s16 = scalar_lea.hbm %s462_s5, 16 }
   0x8   :  { %274 = vmatpush3.bf16.msra.mxu0 %v273_v8  ;;  %v282_v18 = vpack.c.bf16 %v40_v17, %v39_v16  ;;  %v42_v20 = vld [vmem:[%s458_s1 + $0x58] sm:$0xff]  ;;  %v43_v22 = vld [vmem:[%s458_s1 + $0x60] sm:$0xff]  ;;  %v44_v23 = vld [vmem:[%s458_s1 + $0x68] sm:$0xff]  ;;  %v119_v30 = vshrl.u32 %v118_v29, 7  ;;  %v124_v31 = vand.u32 127, %v118_v29  ;;  %p307_p0 = scmp.ne.s32.totalorder %s462_s5, %s306_s16  ;;  %p310_p1 = scmp.lt.u32.totalorder %s306_s16, %s462_s5 }
   0x9   :  { %275 = vmatprep.subr.bf16.mxu0 %v330_v3  ;;  %v285_v21 = vpack.c.bf16 %v42_v20, %v41_v19  ;;  %v288_v24 = vpack.c.bf16 %v44_v23, %v43_v22  ;;  %v45_v25 = vld [vmem:[%s458_s1 + $0x70] sm:$0xff]  ;;  %v46_v26 = vld [vmem:[%s458_s1 + $0x78] sm:$0xff]  ;;  %v30_v28 = vld [vmem:[%s457_s0] sm:$0xff] }
   0xa   :  { %v291_v27 = vpack.c.bf16 %v46_v26, %v45_v25  ;;  %v214_v32 = vld [vmem:[%s460_s3] ss:$0 sm:$0xff]  ;;  %vm134_vm1 = vcmp.eq.s32.totalorder %v119_v30, %v124_v31  ;;  %vm128_vm2 = vcmp.lt.s32.totalorder %v124_v31, 8  ;;  %s334_s3 = smov 3e+38   ;;  %p312_p2 = pnand %p310_p1, %p307_p0 }
   0xc   :  { %277 = vmatpush3.bf16.msra.mxu0 %v276_v12 }
   0xd   :  { %278 = vmatprep.subr.bf16.mxu0 %v330_v3 }
  0x10   :  { %280 = vmatpush3.bf16.msra.mxu0 %v279_v15 }
  0x11   :  { %281 = vmatprep.subr.bf16.mxu0 %v330_v3 }
  0x14   :  { %283 = vmatpush3.bf16.msra.mxu0 %v282_v18 }
  0x15   :  { %284 = vmatprep.subr.bf16.mxu0 %v330_v3 }
  0x18   :  { %286 = vmatpush3.bf16.msra.mxu0 %v285_v21 }
  0x19   :  { %287 = vmatprep.subr.bf16.mxu0 %v330_v3 }
  0x1c   :  { %289 = vmatpush3.bf16.msra.mxu0 %v288_v24 }
  0x1d   :  { %290 = vmatprep.subr.bf16.mxu0 %v330_v3 }
  0x20   :  { %292 = vmatpush3.bf16.msra.mxu0 %v291_v27 }
  0x23   :  { %267 = vmatmul.mubr.f32.vlgmr.msra.gmra.mrb[0].mxu0 %v30_v28 }
  0x83   :  { %v139_v33 = vpop.permute.xlu0 %138 }
  0x84   :  { %vm144_vm3 = vcmp.eq.s32.totalorder %v139_v33, %v214_v32 }
  0xf6   :  { %v113_v34 = vpop.f32.mrb[0].mxu0 }
  0xf7   :  { %v145_v35 = vsel %vm134_vm1, 3e+38, %v113_v34  ;;  %v268_v36 = vpop.f32.mrb[1].mxu0 }
  0xf8   :  { %v146_v37 = vsel %vm128_vm2, %v145_v35, -3e+38 }
  0xf9   :  { %147 = vst [vmem:[%s461_s4] sm:$0xff] %v146_v37  ;;  %v158_v38 = vsel %vm144_vm3, -3e+38, %v146_v37  ;;  %v148_v39 = vsel %vm144_vm3, %v146_v37, 3e+38 }
  0xfa   :  { %159 = vmax.xlane.f32.xlu1 %v158_v38  ;;  %149 = vmin.xlane.f32.xlu0 %v148_v39 }
 0x187   :  { %v160_v40 = vpop.xlane.xlu1 %159  ;;  %v150_v41 = vpop.xlane.xlu0 %149 }
 0x188   :  { %v161_v42 = vrot.slane %v160_v40, 4  ;;  %v151_v43 = vrot.slane %v150_v41, 4 }
 0x18a   :  { %v162_v44 = vmax.f32 %v160_v40, %v161_v42  ;;  %v152_v45 = vmin.f32 %v150_v41, %v151_v43 }
 0x18c   :  { %v163_v46 = vrot.slane %v162_v44, 2  ;;  %v153_v47 = vrot.slane %v152_v45, 2 }
 0x18e   :  { %v164_v48 = vmax.f32 %v162_v44, %v163_v46  ;;  %v154_v49 = vmin.f32 %v152_v45, %v153_v47 }
 0x190   :  { %v155_v50 = vrot.slane %v154_v49, 1  ;;  %v165_v51 = vrot.slane %v164_v48, 1 }
 0x192   :  { %v156_v52 = vmin.f32 %v154_v49, %v155_v50  ;;  %v166_v53 = vmax.f32 %v164_v48, %v165_v51 }
 0x194   :  { %293 = vpush %v156_v52 }
 0x195   :  { %295 = vpush %v166_v53 }
 0x1c5   :  { %s294_s0 = spop %293 }
 0x1c6   :  { %s169_s4 = smin.f32 %s334_s3, %s294_s0  ;;  %s296_s11 = spop %295 }
 0x1c7   :  { %s173_s13 = smax.f32 %s335_s12, %s296_s11  ;;  %181 = sst [smem:[#allocation3]] %s169_s4 }
 0x1c8   :  { %184 = sst [smem:[#allocation5]] %s173_s13 }
 0x1c9   :  { %315 = shalt.err (!%p312_p2)
}
 0x1ca   :  { %s336_s20 = smov [#allocation3]   ;;  %s316_s25 = scalar_lea.hbm %s463_s6, 16 }
 0x1cb   :  { %194 = dma.smem_to_hbm %s336_s20, 16, %s462_s5, [#allocation4]  }
 0x1cc   :  { %p317_p3 = scmp.ne.s32.totalorder %s463_s6, %s316_s25  ;;  %p320_p4 = scmp.lt.u32.totalorder %s316_s25, %s463_s6 }
 0x1ce   :  { %p322_p5 = pnand %p320_p4, %p317_p3 }
 0x1d0   :  { %325 = shalt.err (!%p322_p5)
}
 0x1d1   :  { %s337_s30 = smov [#allocation5]  }
 0x1d2   :  { %202 = dma.smem_to_hbm %s337_s30, 16, %s463_s6, [#allocation6]  }
 0x1d3   :  { %326 = dma.done.wait [#allocation4], 16  }
 0x1d4   :  { %327 = vsyncadd [#allocation4], 4294967280 }
 0x1d5   :  { %328 = dma.done.wait [#allocation6], 16  }
 0x1d6   :  { %329 = vsyncadd [#allocation6], 4294967280 }
 0x1d7   :  { %211 = sfence }
 0x1d8   :  { %212 = vsyncpa [#allocation4], 1 }
 0x1d9   :  { %213 = vsyncpa [#allocation6], 1 }

// kernel: _ms_forward.3
= control target key start
LH: loop header
LB: loop body
LE: loop exit
PB: predicated region body
PF: predicated region fallthrough
CT: control target
= control target key end

     0   :  { %12 = vsyncpa [#allocation6], 0  ;;  %s308_s0 = inlined_call_operand.vmem [shape: f32[2], index: 0, kind: input, shape index: {}]   ;;  %s309_s1 = inlined_call_operand.vmem [shape: f32[8,128], index: 1, kind: input, shape index: {}]   ;;  %s310_s2 = inlined_call_operand.vmem [shape: s32[8,1], index: 2, kind: input, shape index: {}]   ;;  %s311_s3 = inlined_call_operand.vmem [shape: s32[1,128], index: 3, kind: input, shape index: {}]   ;;  %s312_s4 = inlined_call_operand.vmem [shape: f32[8,1], index: 4, kind: input, shape index: {}]   ;;  %s313_s5 = inlined_call_operand.hbm [shape: f32[1,1], index: 5, kind: output, shape index: {0}]   ;;  %s314_s6 = inlined_call_operand.hbm [shape: f32[1,1], index: 6, kind: output, shape index: {1}]  }
   0x1   :  { %13 = vsyncpa [#allocation5], 0 }
   0x2   :  { %14 = vsyncpa [#allocation9], 0  ;;  %s21_s23 = sshll.u32 %s308_s0, 4  ;;  %s22_s23 = int_to_ptr.vmem [resolvable:$true] %s21_s23 }
   0x3   :  { %s184_s24 = scalar_lea.vmem %s22_s23, 16  ;;  %p189_p1 = scmp.lt.s32.totalorder %s22_s23, %s22_s23 }
   0x4   :  { %p185_p0 = scmp.ne.s32.totalorder %s22_s23, %s184_s24  ;;  %p190_p2 = scmp.lt.s32.totalorder %s184_s24, %s184_s24 }
   0x6   :  { %p191_p3 = por %p190_p2, %p189_p1 }
   0x8   :  { %p192_p4 = pnand %p191_p3, %p185_p0 }
   0xa   :  { %195 = shalt.err (!%p192_p4)
}
   0xb   :  { %s222_s25 = smov [#allocation4]  }
   0xc   :  { %24 = dma.vmem_to_smem %s22_s23, 16, %s222_s25, [#allocation6]  }
   0xd   :  { %216 = dma.done.wait [#allocation6], 16  }
   0xe   :  { %217 = vsyncadd [#allocation6], 4294967280 }
   0xf   :  { %36 = sfence }
  0x10   :  { %v45_v0 = vld [vmem:[%s310_s2] sm:$0xff]  ;;  %v223_v1 = vmov 0   ;;  %s55_s0 = sld [smem:[#allocation4]]  ;;  %s161_s28 = sld [smem:[#allocation4 + $0x1]]  ;;  %vm224_vm4 = vmmov 1   ;;  %vm41_vm7 = vcmask 7168  }
  0x11   :  { %175 = vset.pattern.permute.xlu0 %v223_v1  ;;  %v44_v3 = vld [vmem:[%s309_s1] sm:$0xff]  ;;  %v225_v16 = vmov 0.0   ;;  %s196_s10 = scalar_lea.hbm %s313_s5, 16 }
  0x12   :  { %48 = vperm.xlu0 %175, %v45_v0   ;;  %v160_v4 = vld [vmem:[%s311_s3] ss:$0 sm:$0xff]  ;;  %v162_v6 = vadd.f32 -0.5, %v44_v3  ;;  %42 = vst.msk [vmem:[#allocation2] sm:$0xff] %vm41_vm7, %v225_v16  ;;  %43 = vst.msk [vmem:[#allocation3] sm:$0xff] %vm41_vm7, %v225_v16  ;;  %p197_p5 = scmp.ne.s32.totalorder %s313_s5, %s196_s10  ;;  %p200_p6 = scmp.lt.u32.totalorder %s196_s10, %s313_s5 }
  0x13   :  { %v107_v30 = vld [vmem:[%s312_s4] sm:$0xff] }
  0x14   :  { %p202_p7 = pnand %p200_p6, %p197_p5 }
  0x16   :  { %v57_v2 = vstv %s55_s0  ;;  %v61_v5 = vstv %s161_s28 }
  0x17   :  { %vm58_vm0 = vcmp.lt.f32.partialorder %v44_v3, %v57_v2  ;;  %vm62_vm2 = vcmp.gt.f32.partialorder %v44_v3, %v61_v5 }
  0x19   :  { %v65_v17 = vld [vmem:[#allocation2] sm:$0xff]  ;;  %v75_v19 = vld [vmem:[#allocation3] sm:$0xff] }
  0x91   :  { %v49_v7 = vpop.permute.xlu0 %48 }
  0x92   :  { %vm54_vm1 = vcmp.eq.s32.totalorder %v49_v7, %v160_v4 }
  0x93   :  { %vm59_vm3 = vmand %vm54_vm1, %vm58_vm0 }
  0x94   :  { %vm60_vm5 = vmxor %vm54_vm1, %vm224_vm4  ;;  %v66_v8 = vsel %vm59_vm3, %v162_v6, 0.0 }
  0x95   :  { %vm63_vm6 = vmand %vm60_vm5, %vm62_vm2  ;;  %v67_v9 = vmul.f32 -2.0, %v66_v8 }
  0x96   :  { %v76_v10 = vsel %vm63_vm6, %v162_v6, 0.0 }
  0x97   :  { %v68_v11 = vmul.f32 1.442695, %v67_v9  ;;  %v77_v12 = vmul.f32 40.0, %v76_v10 }
  0x99   :  { %176 = vpow2.f32 %v68_v11  ;;  %v78_v13 = vmul.f32 1.442695, %v77_v12 }
  0x9b   :  { %178 = vpow2.f32 %v78_v13 }
  0xa3   :  { %v177_v14 = vpop.eup %176 }
  0xa4   :  { %70 = vadd.xlane.f32.xlu0 %v177_v14 }
  0xa5   :  { %v179_v15 = vpop.eup %178 }
  0xa6   :  { %80 = vadd.xlane.f32.xlu1 %v179_v15 }
 0x131   :  { %v71_v18 = vpop.xlane.xlu0 %70 }
 0x132   :  { %v72_v20 = vadd.f32 %v71_v18, %v65_v17 }
 0x133   :  { %v81_v21 = vpop.xlane.xlu1 %80 }
 0x134   :  { %74 = vst.msk [vmem:[#allocation2] sm:$0xff] %vm41_vm7, %v72_v20  ;;  %v82_v22 = vadd.f32 %v81_v21, %v75_v19 }
 0x136   :  { %83 = vst.msk [vmem:[#allocation3] sm:$0xff] %vm41_vm7, %v82_v22 }
 0x13b   :  { %v87_v23 = vld [vmem:[#allocation2] sm:$0xff] }
 0x13c   :  { %v163_v24 = vadd.f32 -119.0, %v87_v23 }
 0x13d   :  { %v93_v25 = vld [vmem:[#allocation3] sm:$0xff] }
 0x13e   :  { %180 = vlog2.f32 %v163_v24  ;;  %v164_v26 = vadd.f32 -119.0, %v93_v25 }
 0x140   :  { %182 = vlog2.f32 %v164_v26 }
 0x148   :  { %v181_v27 = vpop.eup %180 }
 0x149   :  { %v90_v28 = vmul.f32 0.6931472, %v181_v27 }
 0x14a   :  { %v183_v29 = vpop.eup %182 }
 0x14b   :  { %v92_v31 = vmul.f32 0.5, %v90_v28  ;;  %v96_v32 = vmul.f32 0.6931472, %v183_v29 }
 0x14d   :  { %v108_v33 = vmul.f32 %v107_v30, %v92_v31  ;;  %v98_v35 = vmul.f32 0.025, %v96_v32 }
 0x14f   :  { %v109_v34 = vsel %vm41_vm7, %v108_v33, 0.0  ;;  %v122_v36 = vsel %vm41_vm7, %v98_v35, 0.0 }
 0x150   :  { %110 = vadd.xlane.f32.xlu1 %v109_v34 }
 0x154   :  { %123 = vadd.xlane.f32.xlu1 %v122_v36 }
 0x1dd   :  { %v111_v37 = vpop.xlane.xlu1 %110 }
 0x1de   :  { %v112_v38 = vrot.slane %v111_v37, 4 }
 0x1e0   :  { %v113_v39 = vadd.f32 %v112_v38, %v111_v37 }
 0x1e1   :  { %v124_v40 = vpop.xlane.xlu1 %123 }
 0x1e2   :  { %v114_v41 = vrot.slane %v113_v39, 2  ;;  %v125_v42 = vrot.slane %v124_v40, 4 }
 0x1e4   :  { %v126_v43 = vadd.f32 %v125_v42, %v124_v40  ;;  %v115_v44 = vadd.f32 %v114_v41, %v113_v39 }
 0x1e6   :  { %v127_v45 = vrot.slane %v126_v43, 2  ;;  %v116_v46 = vrot.slane %v115_v44, 1 }
 0x1e8   :  { %v128_v47 = vadd.f32 %v127_v45, %v126_v43  ;;  %v117_v48 = vadd.f32 %v116_v46, %v115_v44 }
 0x1ea   :  { %165 = vpush %v117_v48  ;;  %v129_v49 = vrot.slane %v128_v47, 1 }
 0x1ec   :  { %v130_v50 = vadd.f32 %v129_v49, %v128_v47 }
 0x1ee   :  { %167 = vpush %v130_v50 }
 0x21b   :  { %s166_s3 = spop %165 }
 0x21c   :  { %120 = sst [smem:[#allocation7]] %s166_s3 }
 0x21d   :  { %205 = shalt.err (!%p202_p7)
}
 0x21e   :  { %s226_s15 = smov [#allocation7]   ;;  %s206_s21 = scalar_lea.hbm %s314_s6, 16 }
 0x21f   :  { %141 = dma.smem_to_hbm %s226_s15, 16, %s313_s5, [#allocation5]  }
 0x220   :  { %s168_s18 = spop %167  ;;  %p207_p8 = scmp.ne.s32.totalorder %s314_s6, %s206_s21 }
 0x221   :  { %133 = sst [smem:[#allocation8]] %s168_s18  ;;  %p210_p9 = scmp.lt.u32.totalorder %s206_s21, %s314_s6 }
 0x223   :  { %p212_p10 = pnand %p210_p9, %p207_p8 }
 0x225   :  { %215 = shalt.err (!%p212_p10)
}
 0x226   :  { %s227_s26 = smov [#allocation8]  }
 0x227   :  { %149 = dma.smem_to_hbm %s227_s26, 16, %s314_s6, [#allocation9]  }
 0x228   :  { %218 = dma.done.wait [#allocation5], 16  }
 0x229   :  { %219 = vsyncadd [#allocation5], 4294967280 }
 0x22a   :  { %220 = dma.done.wait [#allocation9], 16  }
 0x22b   :  { %221 = vsyncadd [#allocation9], 4294967280 }
 0x22c   :  { %156 = sfence }
 0x22d   :  { %157 = vsyncpa [#allocation5], 1 }
 0x22e   :  { %158 = vsyncpa [#allocation9], 1 }
 0x22f   :  { %159 = vsyncpa [#allocation6], 1 }

</bundles_post_ra>
